<compile_context>
chip_gen: v7x
topology: tpu7x:2x2x1
jax: 0.10.0
libtpu: 0.0.40
codegen_flags: <defaults>
</compile_context>

<pallas_src>
import functools
import math

import jax
import jax.numpy as jnp
from jax import lax
from jax.experimental import pallas as pl
from jax.experimental.pallas import tpu as pltpu


# --------------------------------------------------------------------------- #
# Kernels
# --------------------------------------------------------------------------- #
def _qkv_projection_kernel(x_ref, wqkv_ref, bqkv_ref, q_ref, k_ref, v_ref, *,
                           d_model, scale):
    """One (batch, seq-tile) step of the fused Q/K/V projection.

    x_ref    : (1, tp, D)   input rows (matmul dtype)
    wqkv_ref : (D, 3D)      [Wq^T | Wk^T | Wv^T] (matmul dtype)
    bqkv_ref : (1, 3D)      [bq | bk | bv] (f32)
    q_ref    : (1, tp, D)   queries, pre-scaled by 1/sqrt(D)
    k_ref    : (1, tp, D)
    v_ref    : (1, tp, D)
    """
    D = d_model
    x = x_ref[0]                                                  # (tp, D)
    # One lane-dense (tp, D) x (D, 3D) MXU matmul; f32 accumulation.
    qkv = jnp.dot(x, wqkv_ref[...], preferred_element_type=jnp.float32)
    qkv = qkv + bqkv_ref[...]                                     # f32 bias add
    # Fold 1/sqrt(D) into q here (S*D multiplies once, never per query tile).
    q_ref[0] = (qkv[:, :D] * scale).astype(q_ref.dtype)
    k_ref[0] = qkv[:, D:2 * D].astype(k_ref.dtype)
    v_ref[0] = qkv[:, 2 * D:].astype(v_ref.dtype)


def _attention_kernel(q_ref, k_ref, v_ref, out_ref, attn_ref):
    """One (batch, query-tile) step of the attention core.

    q_ref   : (1, tq, D)  pre-scaled queries (matmul dtype)
    k_ref   : (1, S,  D)  keys   (matmul dtype, constant along the qi axis)
    v_ref   : (1, S,  D)  values (matmul dtype, constant along the qi axis)
    out_ref : (1, tq, D)
    attn_ref: (1, tq, S)
    """
    # TODO(synk): for very long S add an inner KV-tile online-softmax loop so
    # per-step VMEM stops scaling linearly with S (needed for S >> 4k on v7x).
    q = q_ref[0]                                                  # (tq, D)
    k = k_ref[0]                                                  # (S, D)
    v = v_ref[0]                                                  # (S, D)

    # Attention scores: contract the last dims (native MXU form, no K transpose).
    scores = lax.dot_general(
        q, k, dimension_numbers=(((1,), (1,)), ((), ())),
        preferred_element_type=jnp.float32)                       # (tq, S) f32

    # Numerically stable softmax, entirely in f32.  The normalization uses an
    # exact reciprocal so the *returned* weights match PyTorch softmax exactly
    # (the approx-EUP reciprocal was user-visible in the previous version).
    m = jnp.max(scores, axis=-1, keepdims=True)                   # (tq, 1)
    e = jnp.exp(scores - m)                                       # (tq, S)
    denom = jnp.sum(e, axis=-1, keepdims=True)                    # (tq, 1)
    inv = 1.0 / denom                                             # tq exact divides
    attn_w = e * inv                                              # (tq, S) f32

    # Feed the MXU in the storage (matmul) dtype; accumulate in f32.
    out = jnp.dot(attn_w.astype(v.dtype), v,
                  preferred_element_type=jnp.float32)             # (tq, D)

    out_ref[0] = out.astype(out_ref.dtype)
    attn_ref[0] = attn_w.astype(attn_ref.dtype)


# --------------------------------------------------------------------------- #
# Tiling / chip-aware helpers
# --------------------------------------------------------------------------- #
def _vmem_capacity_bytes():
    """Physical VMEM of the local chip; conservative (v7x-sized) fallback."""
    try:
        return int(pltpu.get_tpu_info().vmem_capacity_bytes)
    except Exception:
        return 64 * 1024 * 1024


def _sublane_multiple(itemsize):
    # Second-to-last block dim: multiple of 8 (4-byte), 16 (2-byte), 32 (1-byte).
    return max(8, 32 // max(1, int(itemsize)))


def _divisor_tiles(S, mult, max_tile):
    return [t for t in range(mult, min(S, max_tile) + 1, mult) if S % t == 0]


def _choose_q_tile(S, D, mm_itemsize, out_itemsize, attn_itemsize,
                   vmem_bytes, kv_buffers):
    """Largest legal query tile whose per-step working set fits the VMEM budget."""
    mult = _sublane_multiple(mm_itemsize)
    budget = int(vmem_bytes * 0.6)                    # leave headroom for spills

    def step_bytes(tq):
        q_blk = 2 * tq * D * mm_itemsize              # double-buffered q tile
        kv_blk = 2 * kv_buffers * S * D * mm_itemsize  # K and V blocks
        out_blk = 2 * tq * D * out_itemsize
        attn_blk = 2 * tq * S * attn_itemsize
        temps = 4 * tq * S * 4                        # scores/e/attn_w (f32) + slack
        return q_blk + kv_blk + out_blk + attn_blk + temps

    cands = _divisor_tiles(S, mult, 512)
    if not cands:
        return S                                      # full-extent block is legal
    for t in reversed(cands):
        if step_bytes(t) <= budget:
            return t
    return cands[0]


# --------------------------------------------------------------------------- #
# pallas_call wrappers
# --------------------------------------------------------------------------- #
def _project_qkv(x_mm, wqkv, bqkv, scale, tp, vmem_limit):
    B, S, D = x_mm.shape
    dt = x_mm.dtype
    isz = dt.itemsize
    kernel = functools.partial(_qkv_projection_kernel, d_model=D, scale=scale)
    cost = pl.CostEstimate(
        flops=int(2 * B * S * D * 3 * D),
        transcendentals=0,
        bytes_accessed=int((B * S * D + 3 * D * D + 3 * B * S * D) * isz + 3 * D * 4),
    )
    out_spec = pl.BlockSpec((1, tp, D), lambda b, i: (b, i, 0))
    return pl.pallas_call(
        kernel,
        out_shape=(jax.ShapeDtypeStruct((B, S, D), dt),) * 3,
        grid_spec=pltpu.PrefetchScalarGridSpec(
            num_scalar_prefetch=0,
            grid=(B, S // tp),
            in_specs=[
                pl.BlockSpec((1, tp, D), lambda b, i: (b, i, 0)),   # x tile
                pl.BlockSpec((D, 3 * D), lambda b, i: (0, 0)),      # fused W_qkv^T
                pl.BlockSpec((1, 3 * D), lambda b, i: (0, 0)),      # fused bias
            ],
            out_specs=[out_spec, out_spec, out_spec],
        ),
        compiler_params=pltpu.CompilerParams(
            dimension_semantics=("parallel", "parallel"),
            vmem_limit_bytes=vmem_limit,
        ),
        cost_estimate=cost,
    )(x_mm, wqkv, bqkv)


def _attention_call(q, k, v, out_dtype, attn_dtype, tq, vmem_limit,
                    kv_buffer_count):
    B, S, D = q.shape
    nq = S // tq
    mm_isz = q.dtype.itemsize
    cost = pl.CostEstimate(
        flops=int(4 * B * S * S * D),
        transcendentals=int(B * S * S),
        bytes_accessed=int(3 * B * S * D * mm_isz
                           + B * S * D * jnp.dtype(out_dtype).itemsize
                           + B * S * S * jnp.dtype(attn_dtype).itemsize),
    )
    kv_kwargs = {}
    if kv_buffer_count is not None:
        # K/V block index never changes along qi -> no overlap benefit from
        # double-buffering; single-buffer to free VMEM for a bigger tq.
        kv_kwargs = dict(pipeline_mode=pl.Buffered(kv_buffer_count))
    kv_spec = pl.BlockSpec((1, S, D), lambda b, qi: (b, 0, 0), **kv_kwargs)
    return pl.pallas_call(
        _attention_kernel,
        out_shape=(
            jax.ShapeDtypeStruct((B, S, D), out_dtype),
            jax.ShapeDtypeStruct((B, S, S), attn_dtype),
        ),
        grid_spec=pltpu.PrefetchScalarGridSpec(
            num_scalar_prefetch=0,
            grid=(B, nq),
            in_specs=[
                pl.BlockSpec((1, tq, D), lambda b, qi: (b, qi, 0)),  # q tile
                kv_spec,                                             # K (full)
                kv_spec,                                             # V (full)
            ],
            out_specs=[
                pl.BlockSpec((1, tq, D), lambda b, qi: (b, qi, 0)),  # attn_output
                pl.BlockSpec((1, tq, S), lambda b, qi: (b, qi, 0)),  # attn_weights
            ],
        ),
        compiler_params=pltpu.CompilerParams(
            # Both axes independent -> megacore / 2-TC sharding stays available.
            dimension_semantics=("parallel", "parallel"),
            vmem_limit_bytes=vmem_limit,
        ),
        cost_estimate=cost,
    )(q, k, v)


# --------------------------------------------------------------------------- #
# Public wrapper
# --------------------------------------------------------------------------- #
def self_attention(x, w_q, b_q, w_k, b_k, w_v, b_v, *,
                   q_tile=None, matmul_dtype=jnp.bfloat16,
                   attn_weights_dtype=None):
    """x: (B, S, D); w_*: (D, D) in nn.Linear (out, in) convention; b_*: (D,).

    Returns (attn_output (B,S,D), attn_weights (B,S,S)) like the PyTorch module.
      q_tile            : override the derived query-tile size.
      matmul_dtype      : MXU operand dtype (default bf16; softmax stays f32).
                          Pass jnp.float32 for exact-parity mode.
      attn_weights_dtype: dtype of the returned weights (pass jnp.bfloat16 to
                          halve the dominant (B,S,S) HBM writeback).
    """
    B, S, D = x.shape
    out_dtype = x.dtype
    attn_dtype = jnp.dtype(attn_weights_dtype if attn_weights_dtype is not None
                           else x.dtype)
    mm_dtype = jnp.dtype(matmul_dtype if matmul_dtype is not None else x.dtype)

    scale = 1.0 / math.sqrt(float(D))

    # nn.Linear computes x @ W.T + b  ->  fuse transposed weights into (D, 3D).
    wqkv = jnp.concatenate([w_q.T, w_k.T, w_v.T], axis=1).astype(mm_dtype)
    bqkv = jnp.concatenate([b_q, b_k, b_v]).reshape(1, 3 * D).astype(jnp.float32)
    x_mm = x.astype(mm_dtype)

    # Per-chip VMEM budget: 64 MiB on v7x, 128 MiB on v5e/v6e.
    vmem_bytes = _vmem_capacity_bytes()
    vmem_limit = int(max(32 * 1024 * 1024,
                         min(int(vmem_bytes * 0.75), 96 * 1024 * 1024)))

    mm_isz = mm_dtype.itemsize
    mult = _sublane_multiple(mm_isz)

    # Projection tile: compute-light, VMEM ~ O(tp*D); just pick the biggest
    # legal divisor.
    tp_cands = _divisor_tiles(S, mult, 512)
    tp = tp_cands[-1] if tp_cands else S

    if q_tile is not None:
        tq = q_tile
        assert S % tq == 0, f"q_tile {tq} must divide S {S}"
        assert tq == S or tq % mult == 0, \
            f"q_tile {tq} must be a multiple of {mult} for dtype {mm_dtype}"
    else:
        tq = _choose_q_tile(S, D, mm_isz, jnp.dtype(out_dtype).itemsize,
                            attn_dtype.itemsize, vmem_bytes, kv_buffers=1)

    # Stage 1: Q/K/V projected exactly once (never re-projected per query tile).
    q, k, v = _project_qkv(x_mm, wqkv, bqkv, scale, tp, vmem_limit)

    # Stage 2: attention core.  Try single-buffered K/V (they only change with
    # the batch index); fall back to default double-buffering if rejected.
    try:
        out, attn = _attention_call(q, k, v, out_dtype, attn_dtype,
                                    tq, vmem_limit, kv_buffer_count=1)
    except Exception:
        out, attn = _attention_call(q, k, v, out_dtype, attn_dtype,
                                    tq, vmem_limit, kv_buffer_count=None)
    return out, attn


# --------------------------------------------------------------------------- #
# Reference + self-test
# --------------------------------------------------------------------------- #
def _reference(x, w_q, b_q, w_k, b_k, w_v, b_v):
    D = x.shape[-1]
    hp = jax.lax.Precision.HIGHEST
    q = jnp.einsum("bsd,od->bso", x, w_q, precision=hp) + b_q
    k = jnp.einsum("bsd,od->bso", x, w_k, precision=hp) + b_k
    v = jnp.einsum("bsd,od->bso", x, w_v, precision=hp) + b_v
    scores = jnp.einsum("bqd,bkd->bqk", q, k, precision=hp) / jnp.sqrt(jnp.float32(D))
    w = jax.nn.softmax(scores, axis=-1)
    return jnp.einsum("bqk,bkd->bqd", w, v, precision=hp), w


if __name__ == "__main__":
    # Small, lane-dense shapes (multiples of (8, 128)).
    B, S, D = 2, 128, 128

    key = jax.random.PRNGKey(0)
    kx, kwq, kwk, kwv, kbq, kbk, kbv = jax.random.split(key, 7)

    x = jax.random.normal(kx, (B, S, D), dtype=jnp.float32)

    # nn.Linear(d_model, d_model): weight (D, D), bias (D,); deterministic init.
    bound = 1.0 / math.sqrt(D)
    w_q = jax.random.uniform(kwq, (D, D), jnp.float32, -bound, bound)
    w_k = jax.random.uniform(kwk, (D, D), jnp.float32, -bound, bound)
    w_v = jax.random.uniform(kwv, (D, D), jnp.float32, -bound, bound)
    b_q = jax.random.uniform(kbq, (D,), jnp.float32, -bound, bound)
    b_k = jax.random.uniform(kbk, (D,), jnp.float32, -bound, bound)
    b_v = jax.random.uniform(kbv, (D,), jnp.float32, -bound, bound)

    ref_out, ref_attn = _reference(x, w_q, b_q, w_k, b_k, w_v, b_v)

    # (1) f32-MXU parity path with an explicitly tiled query grid (grid = (2, 2)).
    out32, attn32 = self_attention(x, w_q, b_q, w_k, b_k, w_v, b_v,
                                   q_tile=64, matmul_dtype=jnp.float32)
    out32 = jax.block_until_ready(out32)
    attn32 = jax.block_until_ready(attn32)
    assert jnp.allclose(out32, ref_out, atol=5e-3, rtol=5e-3), \
        float(jnp.max(jnp.abs(out32 - ref_out)))
    assert jnp.allclose(attn32, ref_attn, atol=5e-3, rtol=5e-3), \
        float(jnp.max(jnp.abs(attn32 - ref_attn)))

    # (2) default bf16-MXU path (recommended on v5e/v6e/v7x; softmax stays f32).
    out_bf, attn_bf = self_attention(x, w_q, b_q, w_k, b_k, w_v, b_v)
    out_bf = jax.block_until_ready(out_bf)
    attn_bf = jax.block_until_ready(attn_bf)
    assert jnp.allclose(out_bf, ref_out, atol=5e-2, rtol=5e-2), \
        float(jnp.max(jnp.abs(out_bf - ref_out)))
    assert jnp.allclose(attn_bf, ref_attn, atol=5e-2, rtol=5e-2), \
        float(jnp.max(jnp.abs(attn_bf - ref_attn)))

    print("KERNEL_OK")
</pallas_src>

<mosaic_0001>
module attributes {stable_mosaic.version = 11 : i64} {
  func.func @_qkv_projection_kernel(%arg0: i32, %arg1: i32, %arg2: memref<1x128x128xf32, #tpu.memory_space<vmem>>, %arg3: memref<128x384xf32, #tpu.memory_space<vmem>>, %arg4: memref<1x384xf32, #tpu.memory_space<vmem>>, %arg5: memref<1x128x128xf32, #tpu.memory_space<vmem>>, %arg6: memref<1x128x128xf32, #tpu.memory_space<vmem>>, %arg7: memref<1x128x128xf32, #tpu.memory_space<vmem>>) attributes {dimension_semantics = [#tpu.dimension_semantics<parallel>, #tpu.dimension_semantics<parallel>], iteration_bounds = array<i64: 2, 1>, scalar_prefetch = 0 : i64, scratch_operands = 0 : i64, tpu.core_type = #tpu.core_type<tc>, window_params = [{transform_indices = @transform_0, window_bounds = array<i64: 1, 128, 128>}, {pipeline_mode = #tpu.pipeline_mode<synchronous>, transform_indices = @transform_1, window_bounds = array<i64: 128, 384>}, {pipeline_mode = #tpu.pipeline_mode<synchronous>, transform_indices = @transform_2, window_bounds = array<i64: 1, 384>}, {transform_indices = @transform_3, window_bounds = array<i64: 1, 128, 128>}, {transform_indices = @transform_4, window_bounds = array<i64: 1, 128, 128>}, {transform_indices = @transform_5, window_bounds = array<i64: 1, 128, 128>}]} {
    %c0 = arith.constant 0 : index
    %c0_0 = arith.constant 0 : index
    %c0_1 = arith.constant 0 : index
    %0 = vector.load %arg2[%c0, %c0_0, %c0_1] : memref<1x128x128xf32, #tpu.memory_space<vmem>>, vector<1x128x128xf32>
    %1 = vector.shape_cast %0 : vector<1x128x128xf32> to vector<128x128xf32>
    %c0_2 = arith.constant 0 : index
    %c0_3 = arith.constant 0 : index
    %2 = vector.load %arg3[%c0_2, %c0_3] : memref<128x384xf32, #tpu.memory_space<vmem>>, vector<128x384xf32>
    %cst = arith.constant dense<0.000000e+00> : vector<128x384xf32>
    %3 = tpu.matmul %1, %2, %cst {dimension_numbers = #tpu.dot_dimension_numbers<[1], [0], [0], [1], [0, 0, 1, 1], [], []>} : vector<128x128xf32>, vector<128x384xf32>, vector<128x384xf32> -> vector<128x384xf32>
    %c0_4 = arith.constant 0 : index
    %c0_5 = arith.constant 0 : index
    %4 = vector.load %arg4[%c0_4, %c0_5] : memref<1x384xf32, #tpu.memory_space<vmem>>, vector<1x384xf32>
    %5 = vector.broadcast %4 : vector<1x384xf32> to vector<128x384xf32>
    %6 = arith.addf %3, %5 : vector<128x384xf32>
    %7 = vector.extract_strided_slice %6 {offsets = [0, 0], sizes = [128, 128], strides = [1, 1]} : vector<128x384xf32> to vector<128x128xf32>
    %cst_6 = arith.constant 0.0883883461 : f32
    %8 = vector.broadcast %cst_6 : f32 to vector<128x128xf32>
    %9 = arith.mulf %7, %8 : vector<128x128xf32>
    %c0_7 = arith.constant 0 : index
    %c0_8 = arith.constant 0 : index
    %c0_9 = arith.constant 0 : index
    %10 = vector.load %arg5[%c0_7, %c0_8, %c0_9] : memref<1x128x128xf32, #tpu.memory_space<vmem>>, vector<1x128x128xf32>
    %11 = vector.shape_cast %10 : vector<1x128x128xf32> to vector<128x128xf32>
    %12 = vector.shape_cast %9 : vector<128x128xf32> to vector<1x128x128xf32>
    tpu.vector_store %arg5[%c0_7, %c0_8, %c0_9], %12 {strides = array<i32>} : memref<1x128x128xf32, #tpu.memory_space<vmem>>, vector<1x128x128xf32>,
    %13 = vector.extract_strided_slice %6 {offsets = [0, 128], sizes = [128, 128], strides = [1, 1]} : vector<128x384xf32> to vector<128x128xf32>
    %c0_10 = arith.constant 0 : index
    %c0_11 = arith.constant 0 : index
    %c0_12 = arith.constant 0 : index
    %14 = vector.load %arg6[%c0_10, %c0_11, %c0_12] : memref<1x128x128xf32, #tpu.memory_space<vmem>>, vector<1x128x128xf32>
    %15 = vector.shape_cast %14 : vector<1x128x128xf32> to vector<128x128xf32>
    %16 = vector.shape_cast %13 : vector<128x128xf32> to vector<1x128x128xf32>
    tpu.vector_store %arg6[%c0_10, %c0_11, %c0_12], %16 {strides = array<i32>} : memref<1x128x128xf32, #tpu.memory_space<vmem>>, vector<1x128x128xf32>,
    %17 = vector.extract_strided_slice %6 {offsets = [0, 256], sizes = [128, 128], strides = [1, 1]} : vector<128x384xf32> to vector<128x128xf32>
    %c0_13 = arith.constant 0 : index
    %c0_14 = arith.constant 0 : index
    %c0_15 = arith.constant 0 : index
    %18 = vector.load %arg7[%c0_13, %c0_14, %c0_15] : memref<1x128x128xf32, #tpu.memory_space<vmem>>, vector<1x128x128xf32>
    %19 = vector.shape_cast %18 : vector<1x128x128xf32> to vector<128x128xf32>
    %20 = vector.shape_cast %17 : vector<128x128xf32> to vector<1x128x128xf32>
    tpu.vector_store %arg7[%c0_13, %c0_14, %c0_15], %20 {strides = array<i32>} : memref<1x128x128xf32, #tpu.memory_space<vmem>>, vector<1x128x128xf32>,
    return
  }
  func.func @transform_0(%arg0: i32, %arg1: i32) -> (i32, i32, i32) {
    %c0_i32 = arith.constant 0 : i32
    %c0_i32_0 = arith.constant 0 : i32
    return %arg0, %arg1, %c0_i32 : i32, i32, i32
  }
  func.func @transform_1(%arg0: i32, %arg1: i32) -> (i32, i32) {
    %c0_i32 = arith.constant 0 : i32
    %c0_i32_0 = arith.constant 0 : i32
    %c0_i32_1 = arith.constant 0 : i32
    return %c0_i32, %c0_i32_0 : i32, i32
  }
  func.func @transform_2(%arg0: i32, %arg1: i32) -> (i32, i32) {
    %c0_i32 = arith.constant 0 : i32
    %c0_i32_0 = arith.constant 0 : i32
    %c0_i32_1 = arith.constant 0 : i32
    return %c0_i32, %c0_i32_0 : i32, i32
  }
  func.func @transform_3(%arg0: i32, %arg1: i32) -> (i32, i32, i32) {
    %c0_i32 = arith.constant 0 : i32
    %c0_i32_0 = arith.constant 0 : i32
    return %arg0, %arg1, %c0_i32 : i32, i32, i32
  }
  func.func @transform_4(%arg0: i32, %arg1: i32) -> (i32, i32, i32) {
    %c0_i32 = arith.constant 0 : i32
    %c0_i32_0 = arith.constant 0 : i32
    return %arg0, %arg1, %c0_i32 : i32, i32, i32
  }
  func.func @transform_5(%arg0: i32, %arg1: i32) -> (i32, i32, i32) {
    %c0_i32 = arith.constant 0 : i32
    %c0_i32_0 = arith.constant 0 : i32
    return %arg0, %arg1, %c0_i32 : i32, i32, i32
  }
}

</mosaic_0001>

<bundles_post_ra>
// kernel: tpu_custom_call.1
= control target key start
LH: loop header
LB: loop body
LE: loop exit
PB: predicated region body
PF: predicated region fallthrough
CT: control target
= control target key end

     0   :  { %s1945_s0 = inlined_call_operand.hbm [shape: f32[2,128,128], index: 0, kind: input, shape index: {}]   ;;  %s1946_s1 = inlined_call_operand.hbm [shape: f32[128,384], index: 1, kind: input, shape index: {}]   ;;  %s1947_s2 = inlined_call_operand.vmem [shape: f32[1,384], index: 2, kind: input, shape index: {}]   ;;  %s1948_s3 = inlined_call_operand.hbm [shape: f32[2,128,128], index: 3, kind: output, shape index: {0}]   ;;  %s1949_s4 = inlined_call_operand.hbm [shape: f32[2,128,128], index: 4, kind: output, shape index: {1}]   ;;  %s1950_s5 = inlined_call_operand.hbm [shape: f32[2,128,128], index: 5, kind: output, shape index: {2}]  }
   0x1   :  { %1955 = sst [smem:[#allocation15_spill]] %s1945_s0 }
   0x2   :  { %1956 = sst [smem:[#allocation16_spill]] %s1946_s1 }
   0x3   :  { %11 = vsyncpa [#allocation3], 0 }
   0x4   :  { %13 = vsyncpa [#allocation3 + $0x1], 0 }
   0x5   :  { %14 = vsyncpa [#allocation6], 0 }
   0x6   :  { %15 = vsyncpa [#allocation4], 0 }
   0x7   :  { %17 = vsyncpa [#allocation4 + $0x1], 0 }
   0x8   :  { %18 = vsyncpa [#allocation9], 0 }
   0x9   :  { %20 = vsyncpa [#allocation9 + $0x1], 0  ;;  %s1498_s18 = smov 0   ;;  %s1500_s19 = smov 0  }
   0xa   :  { %s1502_s20 = smov 0   ;;  %s1504_s21 = smov 0  }
   0xb   :  { %s1506_s22 = smov 0   ;;  %s1508_s23 = smov 0  }
   0xc LB: > { %s1529_s24 = sadd.s32 4294967295, %s1454_s23   ;;  %s1954_s25 = sadd.s32 4294967294, %s1454_s23   ;;  %s1454_s23 = sphi %s1508_s23, %s26_s23   ;;  %s1450_s22 = sphi %s1506_s22, %s1978_s22   ;;  %s1446_s21 = sphi %s1504_s21, %s1977_s21   ;;  %s1442_s20 = sphi %s1502_s20, %s1976_s20   ;;  %s1438_s19 = sphi %s1500_s19, %s1975_s19   ;;  %s1434_s18 = sphi %s1498_s18, %s1974_s18  }
   0xd   : > { %p60_p0 = scmp.ne.s32.totalorder %s1438_s19, %s1434_s18  ;;  %p1951_p1 = scmp.eq.s32.totalorder %s1529_s24, 0 }
   0xe   : > { %p134_p3 = scmp.eq.s32.totalorder %s1954_s25, 1  ;;  %p981_p5 = scmp.ge.s32.totalorder %s1454_s23, 1 }
   0xf   : > { %p1540_p4 = por %p1951_p1, %p60_p0  ;;  %p197_p7 = scmp.lt.s32.totalorder %s1454_s23, 3 }
  0x10   : > { %p1545_p6 = por %p134_p3, %p60_p0  ;;  %s1456_s29 = smov [#allocation5]  }
  0x11   : > { %s1957_s26 = scalar_select %p1540_p4, 1, 0 }
  0x12   : > { %s1958_s27 = scalar_select %p1545_p6, 1, 0 }
  0x13   : > { %p1550_p8 = pnand %p981_p5, %p197_p7  ;;  %s209_s30 = sshll.u32 %s1456_s29, 4  ;;  %s210_s30 = int_to_ptr.vmem [resolvable:$true] %s209_s30 }
  0x14   : > { %s38_s7 = sadd.s32 1, %s1450_s22  ;;  %s1961_s1 = sld [smem:[#allocation16_spill]] }
  0x15   : > { %s1959_s28 = scalar_select %p1550_p8, 1, 0 }
  0x16   : > { %p1172_p9 = pneg %p1550_p8 }
  0x18   : > { %p1559_p11 = pnand %p1172_p9, %p1951_p1 }
  0x1a   : > { %s1250_s10 = scalar_lea.hbm %s1961_s1, 6144  ;;  %p1252_p13 = pneg %p1559_p11 }
  0x1b   : > { %p1251_p12 = scmp.ne.s32.totalorder %s1961_s1, %s1250_s10  ;;  %p1257_p5 = scmp.lt.u32.totalorder %s1250_s10, %s1961_s1 }
  0x1d   : > { %p1253_p0 = pnand %p1252_p13, %p1251_p12 }
  0x1f   : > { %p1254_p3 = pneg %p1253_p0 }
  0x21   : > { %p1259_p7 = pnand %p1257_p5, %p1254_p3 }
  0x23   : > { %1262 = shalt.err (!%p1259_p7)
}
  0x24   : > { %s1263_s15 = scalar_lea.vmem %s210_s30, 6144  ;;  %p1271_p2 = scmp.lt.s32.totalorder %s210_s30, %s210_s30 }
  0x25   : > { %p1264_p9 = scmp.ne.s32.totalorder %s210_s30, %s1263_s15  ;;  %p1272_p6 = scmp.lt.s32.totalorder %s1263_s15, %s1263_s15 }
  0x27   : > { %p1266_p10 = pnand %p1264_p9, %p1252_p13  ;;  %p1273_p4 = por %p1272_p6, %p1271_p2 }
  0x29   : > { %p1267_p1 = pneg %p1266_p10 }
  0x2b   : > { %p1274_p8 = pnand %p1273_p4, %p1267_p1 }
  0x2d   : > { %1277 = shalt.err (!%p1274_p8)
}
  0x2e   : > { %s1457_s16 = smov 384   ;;  %s1458_s17 = smov 24  }
  0x2f   : > { %1175 = dma.hbm_to_vmem [thread:$0]  (!%p1559_p11), %s1961_s1, 6144, %s210_s30, [#allocation6], %s1457_s16, %s1457_s16, %s1458_s17  }
  0x30   : > { %p40_p1 = scmp.ge.s32.totalorder %s38_s7, 2  ;;  %s47_s9 = sadd.s32 1, %s1442_s20 }
  0x31   : > { %p54_p2 = scmp.ne.s32.totalorder %s1442_s20, %s1438_s19  ;;  %p55_p4 = scmp.eq.s32.totalorder %s1454_s23, 0 }
  0x32   : > { %s1980_s7 = smov (%p40_p1, %s38_s7), 0  ;;  %p1963_p8 = scmp.eq.s32.totalorder %s1529_s24, 1 }
  0x33   : > { %p1586_p6 = por %p55_p4, %p54_p2  ;;  %s42_s6 = ssub.s32 %s1450_s22, %s1980_s7 }
  0x34   : > { %p1592_p10 = por %p1963_p8, %p54_p2  ;;  %p1191_p12 = scmp.lt.s32.totalorder %s1454_s23, 2 }
  0x35   : > { %p45_p11 = scmp.eq.s32.totalorder %s42_s6, 0  ;;  %s226_s30 = sand.u32 1, %s1442_s20  }
  0x36   : > { %s984_s12 = sshll.u32 %s226_s30, 7  ;;  %s1004_s14 = sshll.u32 %s1450_s22, 11 }
  0x37   : > { %s1601_s13 = scalar_select %p45_p11, %s1442_s20, %s47_s9  }
  0x38   : > { %s1965_s0 = sld [smem:[#allocation15_spill]]  ;;  %s230_s29 = scalar_lea.vmem [#allocation2], %s984_s12 }
  0x39   : > { %s239_s8 = sshll.u32 %s230_s29, 4  ;;  %p1613_p13 = pnand %p1191_p12, %p1586_p6  ;;  %s1609_s8 = int_to_ptr.vmem [resolvable:$true] %s239_s8 }
  0x3a   : > { %s1617_s9 = scalar_lea.sflag [#allocation3], %s226_s30 }
  0x3b   : > { %p1280_p3 = pneg %p1613_p13 }
  0x3e   : > { %s1607_s17 = scalar_lea.hbm %s1965_s0, %s1004_s14  ;;  %s1283_s10 = scalar_lea.hbm %s1965_s0, 4096 }
  0x3f   : > { %s1278_s15 = scalar_lea.hbm %s1607_s17, 2048  ;;  %p1284_p9 = scmp.lt.u32.totalorder %s1607_s17, %s1965_s0 }
  0x40   : > { %p1279_p0 = scmp.ne.s32.totalorder %s1607_s17, %s1278_s15  ;;  %p1285_p1 = scmp.lt.u32.totalorder %s1283_s10, %s1278_s15 }
  0x41   : > { %p1287_p4 = scmp.lt.u32.totalorder %s1278_s15, %s1607_s17 }
  0x42   : > { %p1281_p5 = pnand %p1280_p3, %p1279_p0  ;;  %p1286_p2 = por %p1285_p1, %p1284_p9 }
  0x44   : > { %p1282_p7 = pneg %p1281_p5  ;;  %p1288_p6 = por %p1287_p4, %p1286_p2 }
  0x46   : > { %p1289_p8 = pnand %p1288_p6, %p1282_p7 }
  0x48   : > { %1292 = shalt.err (!%p1289_p8)
}
  0x49   : > { %s1293_s30 = scalar_lea.vmem %s1609_s8, 2048  ;;  %s1459_s12 = smov [#allocation2]  }
  0x4a   : > { %p1294_p12 = scmp.ne.s32.totalorder %s1609_s8, %s1293_s30  ;;  %s1298_s14 = sshll.u32 %s1459_s12, 4  ;;  %s1299_s14 = int_to_ptr.vmem [resolvable:$false] %s1298_s14 }
  0x4b   : > { %s1300_s16 = scalar_lea.vmem %s1299_s14, 4096  ;;  %p1301_p5 = scmp.lt.s32.totalorder %s1609_s8, %s1299_s14 }
  0x4c   : > { %p1296_p11 = pnand %p1294_p12, %p1280_p3  ;;  %p1302_p9 = scmp.lt.s32.totalorder %s1300_s16, %s1293_s30 }
  0x4e   : > { %p1297_p0 = pneg %p1296_p11  ;;  %p1303_p1 = por %p1302_p9, %p1301_p5 }
  0x50   : > { %p1304_p2 = pnand %p1303_p1, %p1297_p0 }
  0x52   : > { %1307 = shalt.err (!%p1304_p2)
}
  0x53   : > { %s1460_s15 = smov 128   ;;  %s1461_s10 = smov 8  }
  0x54   : > { %1179 = dma.hbm_to_vmem [thread:$0]  (!%p1613_p13), %s1607_s17, 2048, %s1609_s8, %s1617_s9, %s1460_s15, %s1460_s15, %s1461_s10  }
  0x55   : > { %p1967_p3 = scmp.ne.s32.totalorder %s1959_s28, 0 }
  0x56   : > { %s1648_s29 = sand.u32 (!%p1967_p3), 1, %s1438_s19   ;;  %p1968_p7 = scmp.ne.s32.totalorder (!%p1967_p3), %s1957_s26, 0 }
  0x57   : > { %251 = sbr.rel (%p1967_p3) target bundleno = 469 (0x1d5), region = 32  ;;  %s1651_s30 = sshll.u32 (!%p1967_p3), %s1648_s29, 7 }
  0x58   : > { %s254_s12 = scalar_lea.sflag (!%p1967_p3), [#allocation3], %s1648_s29  ;;  %s1655_s14 = scalar_lea.vmem (!%p1967_p3), [#allocation2], %s1651_s30 }
  0x5e   : > { %1417 = dma.done.wait (%p1968_p7), %s254_s12, 2048  }
  0x5f   : > { %1419 = vsyncadd (%p1968_p7), %s254_s12, 4294965248  ;;  %p1969_p13 = scmp.eq.s32.totalorder %s1529_s24, 0 }
  0x61   : > { %1421 = dma.done.wait (%p1969_p13), [#allocation6], 6144   ;;  %p1970_p4 = pmov %p1969_p13 }
  0x62   : > { %v1462_v0 = vmov 0.0   ;;  %v319_v1 = vld [vmem:[#allocation5 + $0x8] sm:$0xff]  ;;  %v322_v2 = vld [vmem:[#allocation5 + $0x20] sm:$0xff]  ;;  %v321_v5 = vld [vmem:[#allocation5 + $0x18] sm:$0xff]  ;;  %s1711_s17 = scalar_lea.vmem [#allocation8], %s1651_s30  ;;  %s1715_s8 = scalar_lea.vmem [#allocation7], %s1651_s30 }
  0x63   : > { %1423 = vsyncadd (%p1970_p4), [#allocation6], 4294961152  ;;  %447 = vmatprep.mubr.f32.mxu0 %v1462_v0  ;;  %v318_v3 = vld [vmem:[#allocation5] sm:$0xff]  ;;  %v1096_v4 = vpack.c.bf16 %v322_v2, %v319_v1  ;;  %v325_v6 = vld [vmem:[#allocation5 + $0x38] sm:$0xff]  ;;  %s1733_s6 = scalar_lea.vmem [#allocation10], %s1651_s30  ;;  %s758_s9 = sand.u32 1, %s1529_s24  }
  0x64   : > { %v328_v7 = vld [vmem:[#allocation5 + $0x50] sm:$0xff]  ;;  %v1098_v8 = vpack.c.bf16 %v321_v5, %v318_v3  ;;  %v327_v11 = vld [vmem:[#allocation5 + $0x48] sm:$0xff]  ;;  %v334_v13 = vld [vmem:[#allocation5 + $0x80] sm:$0xff]  ;;  %s1005_s16 = sshll.u32 %s1446_s21, 11  ;;  %s797_s15 = sshll.u32 %s1711_s17, 4  ;;  %s1823_s15 = int_to_ptr.vmem [resolvable:$true] %s797_s15 }
  0x65   : > { %v1100_v9 = vpack.c.bf16 %v328_v7, %v325_v6  ;;  %v324_v10 = vld [vmem:[#allocation5 + $0x30] sm:$0xff]  ;;  %v331_v12 = vld [vmem:[#allocation5 + $0x68] sm:$0xff]  ;;  %1097 = vmatprep.subr.bf16.mxu0 %v1096_v4  ;;  %v330_v16 = vld [vmem:[#allocation5 + $0x60] sm:$0xff]  ;;  %s779_s10 = sshll.u32 %s1715_s8, 4  ;;  %s1819_s12 = scalar_lea.hbm %s1949_s4, %s1005_s16  ;;  %s1830_s10 = int_to_ptr.vmem [resolvable:$true] %s779_s10 }
  0x66   : > { %1099 = vmatpush1.bf16.msra.mxu0 %v1098_v8  ;;  %v1102_v14 = vpack.c.bf16 %v327_v11, %v324_v10  ;;  %v1104_v15 = vpack.c.bf16 %v334_v13, %v331_v12  ;;  %v333_v17 = vld [vmem:[#allocation5 + $0x78] sm:$0xff]  ;;  %v340_v19 = vld [vmem:[#allocation5 + $0xb0] sm:$0xff]  ;;  %v339_v23 = vld [vmem:[#allocation5 + $0xa8] sm:$0xff]  ;;  %s1828_s28 = scalar_lea.hbm %s1948_s3, %s1005_s16  ;;  %s1841_s25 = scalar_lea.sflag [#allocation9], %s758_s9 }
  0x67   : > { %1101 = vmatprep.subr.bf16.mxu0 %v1100_v9  ;;  %v337_v18 = vld [vmem:[#allocation5 + $0x98] sm:$0xff]  ;;  %v1106_v20 = vpack.c.bf16 %v333_v17, %v330_v16  ;;  %v336_v22 = vld [vmem:[#allocation5 + $0x90] sm:$0xff]  ;;  %v343_v24 = vld [vmem:[#allocation5 + $0xc8] sm:$0xff]  ;;  %s1308_s0 = scalar_lea.vmem %s1823_s15, 2048  ;;  %s1463_s21 = smov [#allocation8]  }
  0x68   : > { %v1108_v21 = vpack.c.bf16 %v340_v19, %v337_v18  ;;  %v346_v25 = vld [vmem:[#allocation5 + $0xe0] sm:$0xff]  ;;  %v320_v27 = vld [vmem:[#allocation5 + $0x10] sm:$0xff]  ;;  %v323_v28 = vld [vmem:[#allocation5 + $0x28] sm:$0xff]  ;;  %v1110_v29 = vpack.c.bf16 %v339_v23, %v336_v22  ;;  %p1309_p6 = scmp.ne.s32.totalorder %s1823_s15, %s1308_s0  ;;  %s1312_s26 = sshll.u32 %s1463_s21, 4  ;;  %s1313_s26 = int_to_ptr.vmem [resolvable:$false] %s1312_s26 }
  0x69   : > { %v1667_v26 = vld [vmem:[%s1655_s14] sm:$0xff]  ;;  %v1128_v31 = vpack.c.bf16 %v323_v28, %v320_v27  ;;  %v329_v33 = vld [vmem:[#allocation5 + $0x58] sm:$0xff]  ;;  %v1112_v34 = vpack.c.bf16 %v346_v25, %v343_v24  ;;  %v332_v37 = vld [vmem:[#allocation5 + $0x70] sm:$0xff]  ;;  %s1314_s1 = scalar_lea.vmem %s1313_s26, 4096  ;;  %p1315_p11 = scmp.lt.s32.totalorder %s1823_s15, %s1313_s26 }
  0x6a   : > { %1103 = vmatpush1.bf16.msra.mxu0 %v1102_v14  ;;  %1072 = vmatprep.mubr.f32.mxu1 %v1667_v26  ;;  %v342_v30 = vld [vmem:[#allocation5 + $0xc0] sm:$0xff]  ;;  %v345_v35 = vld [vmem:[#allocation5 + $0xd8] sm:$0xff]  ;;  %v335_v38 = vld [vmem:[#allocation5 + $0x88] sm:$0xff]  ;;  %p1310_p8 = pnand %p1309_p6, %p1592_p10  ;;  %p1316_p0 = scmp.lt.s32.totalorder %s1314_s1, %s1308_s0 }
  0x6b   : > { %1105 = vmatprep.subr.bf16.mxu0 %v1104_v15  ;;  %v326_v32 = vld [vmem:[#allocation5 + $0x40] sm:$0xff]  ;;  %v349_v39 = vld [vmem:[#allocation5 + $0xf8] sm:$0xff]  ;;  %v352_v40 = vld [vmem:[#allocation5 + $0x110] sm:$0xff]  ;;  %1129 = vmatprep.subr.bf16.mxu1 %v1128_v31  ;;  %v1114_v41 = vpack.c.bf16 %v345_v35, %v342_v30  ;;  %v1136_v43 = vpack.c.bf16 %v335_v38, %v332_v37 }
  0x6c   : > { %v1132_v36 = vpack.c.bf16 %v329_v33, %v326_v32  ;;  %1131 = vmatpush3.bf16.msra.mxu1 %v1128_v31  ;;  %v348_v42 = vld [vmem:[#allocation5 + $0xf0] sm:$0xff]  ;;  %v1116_v44 = vpack.c.bf16 %v352_v40, %v349_v39  ;;  %v351_v45 = vld [vmem:[#allocation5 + $0x108] sm:$0xff]  ;;  %v338_v46 = vld [vmem:[#allocation5 + $0xa0] sm:$0xff]  ;;  %p1311_p12 = pneg %p1310_p8  ;;  %p1317_p5 = por %p1316_p0, %p1315_p11 }
  0x6d   : > { %v341_v47 = vld [vmem:[#allocation5 + $0xb8] sm:$0xff]  ;;  %v355_v48 = vld [vmem:[#allocation5 + $0x128] sm:$0xff]  ;;  %v358_v49 = vld [vmem:[#allocation5 + $0x140] sm:$0xff]  ;;  %v1118_v50 = vpack.c.bf16 %v351_v45, %v348_v42 }
  0x6e   : > { %1107 = vmatpush1.bf16.msra.mxu0 %v1106_v20  ;;  %1133 = vmatprep.subr.bf16.mxu1 %v1132_v36  ;;  %v354_v51 = vld [vmem:[#allocation5 + $0x120] sm:$0xff]  ;;  %v1140_v52 = vpack.c.bf16 %v341_v47, %v338_v46  ;;  %v1120_v53 = vpack.c.bf16 %v358_v49, %v355_v48  ;;  %v357_v54 = vld [vmem:[#allocation5 + $0x138] sm:$0xff]  ;;  %v344_v55 = vld [vmem:[#allocation5 + $0xd0] sm:$0xff]  ;;  %p1318_p9 = pnand %p1317_p5, %p1311_p12 }
  0x6f   : > { %1109 = vmatprep.subr.bf16.mxu0 %v1108_v21  ;;  %v347_v56 = vld [vmem:[#allocation5 + $0xe8] sm:$0xff]  ;;  %v361_v57 = vld [vmem:[#allocation5 + $0x158] sm:$0xff]  ;;  %v364_v58 = vld [vmem:[#allocation5 + $0x170] sm:$0xff]  ;;  %v1122_v59 = vpack.c.bf16 %v357_v54, %v354_v51 }
  0x70   : > { %1135 = vmatpush3.bf16.msra.mxu1 %v1132_v36  ;;  %v360_v60 = vld [vmem:[#allocation5 + $0x150] sm:$0xff]  ;;  %v1144_v61 = vpack.c.bf16 %v347_v56, %v344_v55  ;;  %v1124_v62 = vpack.c.bf16 %v364_v58, %v361_v57  ;;  %v363_v63 = vld [vmem:[#allocation5 + $0x168] sm:$0xff]  ;;  %v350_v1 = vld [vmem:[#allocation5 + $0x100] sm:$0xff] }
  0x71   : > { %1137 = vmatprep.subr.bf16.mxu1 %v1136_v43  ;;  %v353_v2 = vld [vmem:[#allocation5 + $0x118] sm:$0xff]  ;;  %v1126_v3 = vpack.c.bf16 %v363_v63, %v360_v60  ;;  %v356_v5 = vld [vmem:[#allocation5 + $0x130] sm:$0xff]  ;;  %v359_v6 = vld [vmem:[#allocation5 + $0x148] sm:$0xff] }
  0x72   : > { %1111 = vmatpush1.bf16.msra.mxu0 %v1110_v29  ;;  %v1148_v4 = vpack.c.bf16 %v353_v2, %v350_v1  ;;  %v1152_v7 = vpack.c.bf16 %v359_v6, %v356_v5  ;;  %v362_v8 = vld [vmem:[#allocation5 + $0x160] sm:$0xff]  ;;  %v365_v9 = vld [vmem:[#allocation5 + $0x178] sm:$0xff]  ;;  %v303_v10 = vld [vmem:[%s1655_s14 + $0x8] sm:$0xff] }
  0x73   : > { %1113 = vmatprep.subr.bf16.mxu0 %v1112_v34  ;;  %v1156_v11 = vpack.c.bf16 %v365_v9, %v362_v8  ;;  %v304_v12 = vld [vmem:[%s1655_s14 + $0x10] sm:$0xff]  ;;  %v305_v13 = vld [vmem:[%s1655_s14 + $0x18] sm:$0xff]  ;;  %v306_v14 = vld [vmem:[%s1655_s14 + $0x20] sm:$0xff] }
  0x74   : > { %1139 = vmatpush3.bf16.msra.mxu1 %v1136_v43  ;;  %v307_v15 = vld [vmem:[%s1655_s14 + $0x28] sm:$0xff]  ;;  %v308_v16 = vld [vmem:[%s1655_s14 + $0x30] sm:$0xff]  ;;  %v309_v17 = vld [vmem:[%s1655_s14 + $0x38] sm:$0xff] }
  0x75   : > { %1141 = vmatprep.subr.bf16.mxu1 %v1140_v52  ;;  %v310_v18 = vld [vmem:[%s1655_s14 + $0x40] sm:$0xff]  ;;  %v311_v19 = vld [vmem:[%s1655_s14 + $0x48] sm:$0xff]  ;;  %v312_v20 = vld [vmem:[%s1655_s14 + $0x50] sm:$0xff] }
  0x76   : > { %1115 = vmatpush1.bf16.msra.mxu0 %v1114_v41  ;;  %v313_v21 = vld [vmem:[%s1655_s14 + $0x58] sm:$0xff]  ;;  %v314_v22 = vld [vmem:[%s1655_s14 + $0x60] sm:$0xff]  ;;  %v315_v23 = vld [vmem:[%s1655_s14 + $0x68] sm:$0xff] }
  0x77   : > { %1117 = vmatprep.subr.bf16.mxu0 %v1116_v44  ;;  %v316_v24 = vld [vmem:[%s1655_s14 + $0x70] sm:$0xff]  ;;  %v317_v25 = vld [vmem:[%s1655_s14 + $0x78] sm:$0xff]  ;;  %v366_v29 = vld [vmem:[%s1947_s2] sm:$0x7]  ;;  %s815_s14 = sshll.u32 %s1733_s6, 4  ;;  %s1838_s14 = int_to_ptr.vmem [resolvable:$true] %s815_s14 }
  0x78   : > { %1143 = vmatpush3.bf16.msra.mxu1 %v1140_v52 }
  0x79   : > { %1145 = vmatprep.subr.bf16.mxu1 %v1144_v61 }
  0x7a   : > { %1119 = vmatpush1.bf16.msra.mxu0 %v1118_v50 }
  0x7b   : > { %1121 = vmatprep.subr.bf16.mxu0 %v1120_v53 }
  0x7c   : > { %1147 = vmatpush3.bf16.msra.mxu1 %v1144_v61 }
  0x7d   : > { %1149 = vmatprep.subr.bf16.mxu1 %v1148_v4 }
  0x7e   : > { %1123 = vmatpush1.bf16.msra.mxu0 %v1122_v59 }
  0x7f   : > { %1125 = vmatprep.subr.bf16.mxu0 %v1124_v62 }
  0x80   : > { %1151 = vmatpush3.bf16.msra.mxu1 %v1148_v4 }
  0x81   : > { %1153 = vmatprep.subr.bf16.mxu1 %v1152_v7 }
  0x82   : > { %1127 = vmatpush1.bf16.msra.mxu0 %v1126_v3 }
  0x84   : > { %1155 = vmatpush3.bf16.msra.mxu1 %v1152_v7 }
  0x85   : > { %448 = vmatmul.mubr.f32.vlgmr.msra.gmra.mrb[0].mxu0 %v1667_v26  ;;  %1157 = vmatprep.subr.bf16.mxu1 %v1156_v11  ;;  %v368_v26 = vlaneseq }
  0x86   : > { %453 = vmatprep.mubr.f32.mxu0 %v1462_v0 }
  0x87   : > { %v369_v27 = vshrl.u32 %v368_v26, 7 }
  0x88   : > { %1159 = vmatpush3.bf16.msra.mxu1 %v1156_v11 }
  0x89   : > { %454 = vmatmul.mubr.f32.gmra.mrb[2].mxu0 %v303_v10  ;;  %v370_v28 = vsub.s32 0, %v369_v27  ;;  %v374_v30 = vsub.s32 1, %v369_v27  ;;  %v378_v38 = vsub.s32 2, %v369_v27 }
  0x8a   : > { %459 = vmatprep.mubr.f32.mxu0 %v1462_v0 }
  0x8b   : > { %1073 = vmatmul.mubr.f32.vlgmr.msra.gmra.mrb[0].mxu1 %v303_v10  ;;  %v1704_v31 = vrot.slane %v366_v29, %v370_v28  ;;  %v1706_v32 = vrot.slane %v366_v29, %v374_v30  ;;  %v1721_v44 = vrot.slane %v366_v29, %v378_v38 }
  0x8c   : > { %1075 = vmatprep.mubr.f32.mxu1 %v304_v12 }
  0x8d   : > { %460 = vmatmul.mubr.f32.gmra.mrb[4].mxu0 %v304_v12 }
  0x8e   : > { %465 = vmatprep.mubr.f32.mxu0 %v1462_v0 }
  0x8f   : > { %1076 = vmatmul.mubr.f32.gmra.mrb[2].mxu1 %v305_v13 }
  0x90   : > { %1078 = vmatprep.mubr.f32.mxu1 %v306_v14 }
  0x91   : > { %466 = vmatmul.mubr.f32.gmra.mrb[6].mxu0 %v305_v13 }
  0x92   : > { %471 = vmatprep.mubr.f32.mxu0 %v1462_v0 }
  0x93   : > { %1079 = vmatmul.mubr.f32.gmra.mrb[4].mxu1 %v307_v15 }
  0x94   : > { %1081 = vmatprep.mubr.f32.mxu1 %v308_v16 }
  0x95   : > { %472 = vmatmul.mubr.f32.gmra.mrb[8].mxu0 %v306_v14 }
  0x96   : > { %477 = vmatprep.mubr.f32.mxu0 %v1462_v0 }
  0x97   : > { %1082 = vmatmul.mubr.f32.gmra.mrb[6].mxu1 %v309_v17 }
  0x98   : > { %1084 = vmatprep.mubr.f32.mxu1 %v310_v18 }
  0x99   : > { %478 = vmatmul.mubr.f32.gmra.mrb[10].mxu0 %v307_v15 }
  0x9a   : > { %483 = vmatprep.mubr.f32.mxu0 %v1462_v0 }
  0x9b   : > { %1085 = vmatmul.mubr.f32.gmra.mrb[8].mxu1 %v311_v19 }
  0x9c   : > { %1087 = vmatprep.mubr.f32.mxu1 %v312_v20 }
  0x9d   : > { %484 = vmatmul.mubr.f32.gmra.mrb[12].mxu0 %v308_v16 }
  0x9e   : > { %489 = vmatprep.mubr.f32.mxu0 %v1462_v0 }
  0x9f   : > { %1088 = vmatmul.mubr.f32.gmra.mrb[10].mxu1 %v313_v21 }
  0xa0   : > { %1090 = vmatprep.mubr.f32.mxu1 %v314_v22 }
  0xa1   : > { %490 = vmatmul.mubr.f32.gmra.mrb[14].mxu0 %v309_v17 }
  0xa2   : > { %495 = vmatprep.mubr.f32.mxu0 %v1462_v0 }
  0xa3   : > { %1091 = vmatmul.mubr.f32.gmra.mrb[12].mxu1 %v315_v23 }
  0xa4   : > { %1093 = vmatprep.mubr.f32.mxu1 %v316_v24 }
  0xa5   : > { %496 = vmatmul.mubr.f32.gmra.mrb[16].mxu0 %v310_v18 }
  0xa6   : > { %501 = vmatprep.mubr.f32.mxu0 %v1462_v0 }
  0xa7   : > { %1094 = vmatmul.mubr.f32.gmra.mrb[14].mxu1 %v317_v25 }
  0xa9   : > { %502 = vmatmul.mubr.f32.gmra.mrb[18].mxu0 %v311_v19 }
  0xaa   : > { %507 = vmatprep.mubr.f32.mxu0 %v1462_v0 }
  0xad   : > { %508 = vmatmul.mubr.f32.gmra.mrb[20].mxu0 %v312_v20 }
  0xae   : > { %513 = vmatprep.mubr.f32.mxu0 %v1462_v0 }
  0xb1   : > { %514 = vmatmul.mubr.f32.gmra.mrb[22].mxu0 %v313_v21 }
  0xb2   : > { %519 = vmatprep.mubr.f32.mxu0 %v1462_v0 }
  0xb5   : > { %520 = vmatmul.mubr.f32.gmra.mrb[24].mxu0 %v314_v22 }
  0xb6   : > { %525 = vmatprep.mubr.f32.mxu0 %v1462_v0 }
  0xb9   : > { %526 = vmatmul.mubr.f32.gmra.mrb[26].mxu0 %v315_v23 }
  0xba   : > { %531 = vmatprep.mubr.f32.mxu0 %v1462_v0 }
  0xbd   : > { %532 = vmatmul.mubr.f32.gmra.mrb[28].mxu0 %v316_v24 }
  0xbe   : > { %537 = vmatprep.mubr.f32.mxu0 %v1462_v0 }
  0xc1   : > { %538 = vmatmul.mubr.f32.gmra.mrb[30].mxu0 %v317_v25 }
 0x158   : > { %v449_v33 = vpop.f32.mrb[0].mxu0 }
 0x159   : > { %v450_v34 = vadd.f32 %v449_v33, %v1704_v31  ;;  %v451_v35 = vpop.f32.mrb[1].mxu0 }
 0x15a   : > { %v452_v0 = vadd.f32 %v451_v35, %v1706_v32 }
 0x15b   : > { %v689_v36 = vmul.f32 0.088388346, %v450_v34 }
 0x15c   : > { %721 = vst [vmem:[%s1711_s17] sm:$0xff] %v452_v0  ;;  %v455_v37 = vpop.f32.mrb[2].mxu0 }
 0x15d   : > { %705 = vst [vmem:[%s1715_s8] sm:$0xff] %v689_v36  ;;  %v456_v39 = vadd.f32 %v455_v37, %v1704_v31  ;;  %v457_v40 = vpop.f32.mrb[3].mxu0 }
 0x15e   : > { %v458_v41 = vadd.f32 %v457_v40, %v1706_v32  ;;  %v1074_v49 = vpop.f32.mrb[0].mxu1 }
 0x15f   : > { %v690_v42 = vmul.f32 0.088388346, %v456_v39  ;;  %v616_v51 = vadd.f32 %v1074_v49, %v1721_v44  ;;  %v610_v52 = vpop.f32.mrb[1].mxu1 }
 0x160   : > { %722 = vst [vmem:[%s1711_s17 + $0x8] sm:$0xff] %v458_v41  ;;  %v461_v43 = vpop.f32.mrb[4].mxu0  ;;  %v611_v55 = vadd.f32 %v610_v52, %v1721_v44 }
 0x161   : > { %706 = vst [vmem:[%s1715_s8 + $0x8] sm:$0xff] %v690_v42  ;;  %v462_v45 = vadd.f32 %v461_v43, %v1704_v31  ;;  %v463_v46 = vpop.f32.mrb[5].mxu0  ;;  %738 = vst [vmem:[%s1733_s6 + $0x8] sm:$0xff] %v616_v51 }
 0x162   : > { %v464_v47 = vadd.f32 %v463_v46, %v1706_v32  ;;  %737 = vst [vmem:[%s1733_s6] sm:$0xff] %v611_v55  ;;  %v1077_v58 = vpop.f32.mrb[2].mxu1 }
 0x163   : > { %v691_v48 = vmul.f32 0.088388346, %v462_v45  ;;  %v626_v60 = vadd.f32 %v1077_v58, %v1721_v44  ;;  %v620_v61 = vpop.f32.mrb[3].mxu1 }
 0x164   : > { %723 = vst [vmem:[%s1711_s17 + $0x10] sm:$0xff] %v464_v47  ;;  %v467_v50 = vpop.f32.mrb[6].mxu0  ;;  %v621_v1 = vadd.f32 %v620_v61, %v1721_v44 }
 0x165   : > { %707 = vst [vmem:[%s1715_s8 + $0x10] sm:$0xff] %v691_v48  ;;  %v468_v53 = vadd.f32 %v467_v50, %v1704_v31  ;;  %v469_v54 = vpop.f32.mrb[7].mxu0  ;;  %740 = vst [vmem:[%s1733_s6 + $0x18] sm:$0xff] %v626_v60 }
 0x166   : > { %v470_v56 = vadd.f32 %v469_v54, %v1706_v32  ;;  %739 = vst [vmem:[%s1733_s6 + $0x10] sm:$0xff] %v621_v1  ;;  %v1080_v4 = vpop.f32.mrb[4].mxu1 }
 0x167   : > { %v692_v57 = vmul.f32 0.088388346, %v468_v53  ;;  %v636_v6 = vadd.f32 %v1080_v4, %v1721_v44  ;;  %v630_v7 = vpop.f32.mrb[5].mxu1 }
 0x168   : > { %724 = vst [vmem:[%s1711_s17 + $0x18] sm:$0xff] %v470_v56  ;;  %v473_v59 = vpop.f32.mrb[8].mxu0  ;;  %v631_v10 = vadd.f32 %v630_v7, %v1721_v44 }
 0x169   : > { %708 = vst [vmem:[%s1715_s8 + $0x18] sm:$0xff] %v692_v57  ;;  %v474_v62 = vadd.f32 %v473_v59, %v1704_v31  ;;  %v475_v63 = vpop.f32.mrb[9].mxu0  ;;  %742 = vst [vmem:[%s1733_s6 + $0x28] sm:$0xff] %v636_v6 }
 0x16a   : > { %v476_v2 = vadd.f32 %v475_v63, %v1706_v32  ;;  %741 = vst [vmem:[%s1733_s6 + $0x20] sm:$0xff] %v631_v10  ;;  %v1083_v13 = vpop.f32.mrb[6].mxu1 }
 0x16b   : > { %v693_v3 = vmul.f32 0.088388346, %v474_v62  ;;  %v646_v15 = vadd.f32 %v1083_v13, %v1721_v44  ;;  %v640_v16 = vpop.f32.mrb[7].mxu1 }
 0x16c   : > { %725 = vst [vmem:[%s1711_s17 + $0x20] sm:$0xff] %v476_v2  ;;  %v479_v5 = vpop.f32.mrb[10].mxu0  ;;  %v641_v19 = vadd.f32 %v640_v16, %v1721_v44 }
 0x16d   : > { %709 = vst [vmem:[%s1715_s8 + $0x20] sm:$0xff] %v693_v3  ;;  %v480_v8 = vadd.f32 %v479_v5, %v1704_v31  ;;  %v481_v9 = vpop.f32.mrb[11].mxu0  ;;  %744 = vst [vmem:[%s1733_s6 + $0x38] sm:$0xff] %v646_v15 }
 0x16e   : > { %v482_v11 = vadd.f32 %v481_v9, %v1706_v32  ;;  %743 = vst [vmem:[%s1733_s6 + $0x30] sm:$0xff] %v641_v19  ;;  %v1086_v22 = vpop.f32.mrb[8].mxu1 }
 0x16f   : > { %v694_v12 = vmul.f32 0.088388346, %v480_v8  ;;  %v656_v24 = vadd.f32 %v1086_v22, %v1721_v44  ;;  %v650_v25 = vpop.f32.mrb[9].mxu1 }
 0x170   : > { %726 = vst [vmem:[%s1711_s17 + $0x28] sm:$0xff] %v482_v11  ;;  %v485_v14 = vpop.f32.mrb[12].mxu0  ;;  %v651_v28 = vadd.f32 %v650_v25, %v1721_v44 }
 0x171   : > { %710 = vst [vmem:[%s1715_s8 + $0x28] sm:$0xff] %v694_v12  ;;  %v486_v17 = vadd.f32 %v485_v14, %v1704_v31  ;;  %v487_v18 = vpop.f32.mrb[13].mxu0  ;;  %746 = vst [vmem:[%s1733_s6 + $0x48] sm:$0xff] %v656_v24 }
 0x172   : > { %v488_v20 = vadd.f32 %v487_v18, %v1706_v32  ;;  %745 = vst [vmem:[%s1733_s6 + $0x40] sm:$0xff] %v651_v28  ;;  %v1089_v33 = vpop.f32.mrb[10].mxu1 }
 0x173   : > { %v695_v21 = vmul.f32 0.088388346, %v486_v17  ;;  %v666_v35 = vadd.f32 %v1089_v33, %v1721_v44  ;;  %v660_v0 = vpop.f32.mrb[11].mxu1 }
 0x174   : > { %727 = vst [vmem:[%s1711_s17 + $0x30] sm:$0xff] %v488_v20  ;;  %v491_v23 = vpop.f32.mrb[14].mxu0  ;;  %v661_v38 = vadd.f32 %v660_v0, %v1721_v44 }
 0x175   : > { %711 = vst [vmem:[%s1715_s8 + $0x30] sm:$0xff] %v695_v21  ;;  %v492_v26 = vadd.f32 %v491_v23, %v1704_v31  ;;  %v493_v27 = vpop.f32.mrb[15].mxu0  ;;  %748 = vst [vmem:[%s1733_s6 + $0x58] sm:$0xff] %v666_v35 }
 0x176   : > { %v494_v29 = vadd.f32 %v493_v27, %v1706_v32  ;;  %747 = vst [vmem:[%s1733_s6 + $0x50] sm:$0xff] %v661_v38  ;;  %v1092_v41 = vpop.f32.mrb[12].mxu1 }
 0x177   : > { %v696_v30 = vmul.f32 0.088388346, %v492_v26  ;;  %v676_v43 = vadd.f32 %v1092_v41, %v1721_v44  ;;  %v670_v45 = vpop.f32.mrb[13].mxu1 }
 0x178   : > { %728 = vst [vmem:[%s1711_s17 + $0x38] sm:$0xff] %v494_v29  ;;  %v497_v34 = vpop.f32.mrb[16].mxu0  ;;  %v671_v48 = vadd.f32 %v670_v45, %v1721_v44 }
 0x179   : > { %712 = vst [vmem:[%s1715_s8 + $0x38] sm:$0xff] %v696_v30  ;;  %v498_v36 = vadd.f32 %v497_v34, %v1704_v31  ;;  %v499_v37 = vpop.f32.mrb[17].mxu0  ;;  %750 = vst [vmem:[%s1733_s6 + $0x68] sm:$0xff] %v676_v43 }
 0x17a   : > { %v500_v39 = vadd.f32 %v499_v37, %v1706_v32  ;;  %749 = vst [vmem:[%s1733_s6 + $0x60] sm:$0xff] %v671_v48  ;;  %v1095_v51 = vpop.f32.mrb[14].mxu1 }
 0x17b   : > { %v697_v40 = vmul.f32 0.088388346, %v498_v36  ;;  %v686_v53 = vadd.f32 %v1095_v51, %v1721_v44  ;;  %v680_v54 = vpop.f32.mrb[15].mxu1 }
 0x17c   : > { %729 = vst [vmem:[%s1711_s17 + $0x40] sm:$0xff] %v500_v39  ;;  %v503_v42 = vpop.f32.mrb[18].mxu0  ;;  %v681_v57 = vadd.f32 %v680_v54, %v1721_v44 }
 0x17d   : > { %713 = vst [vmem:[%s1715_s8 + $0x40] sm:$0xff] %v697_v40  ;;  %v504_v46 = vadd.f32 %v503_v42, %v1704_v31  ;;  %v505_v47 = vpop.f32.mrb[19].mxu0  ;;  %752 = vst [vmem:[%s1733_s6 + $0x78] sm:$0xff] %v686_v53 }
 0x17e   : > { %v506_v49 = vadd.f32 %v505_v47, %v1706_v32  ;;  %751 = vst [vmem:[%s1733_s6 + $0x70] sm:$0xff] %v681_v57  ;;  %s1836_s6 = scalar_lea.hbm %s1950_s5, %s1005_s16 }
 0x17f   : > { %v698_v50 = vmul.f32 0.088388346, %v504_v46 }
 0x180   : > { %730 = vst [vmem:[%s1711_s17 + $0x48] sm:$0xff] %v506_v49  ;;  %v509_v52 = vpop.f32.mrb[20].mxu0 }
 0x181   : > { %714 = vst [vmem:[%s1715_s8 + $0x48] sm:$0xff] %v698_v50  ;;  %v510_v55 = vadd.f32 %v509_v52, %v1704_v31  ;;  %v511_v56 = vpop.f32.mrb[21].mxu0 }
 0x182   : > { %v512_v58 = vadd.f32 %v511_v56, %v1706_v32 }
 0x183   : > { %v699_v59 = vmul.f32 0.088388346, %v510_v55 }
 0x184   : > { %731 = vst [vmem:[%s1711_s17 + $0x50] sm:$0xff] %v512_v58  ;;  %v515_v60 = vpop.f32.mrb[22].mxu0 }
 0x185   : > { %715 = vst [vmem:[%s1715_s8 + $0x50] sm:$0xff] %v699_v59  ;;  %v516_v61 = vadd.f32 %v515_v60, %v1704_v31  ;;  %v517_v62 = vpop.f32.mrb[23].mxu0 }
 0x186   : > { %v518_v63 = vadd.f32 %v517_v62, %v1706_v32 }
 0x187   : > { %v700_v1 = vmul.f32 0.088388346, %v516_v61 }
 0x188   : > { %732 = vst [vmem:[%s1711_s17 + $0x58] sm:$0xff] %v518_v63  ;;  %v521_v44 = vpop.f32.mrb[24].mxu0 }
 0x189   : > { %716 = vst [vmem:[%s1715_s8 + $0x58] sm:$0xff] %v700_v1  ;;  %v522_v2 = vadd.f32 %v521_v44, %v1704_v31  ;;  %v523_v3 = vpop.f32.mrb[25].mxu0 }
 0x18a   : > { %v524_v4 = vadd.f32 %v523_v3, %v1706_v32 }
 0x18b   : > { %v701_v5 = vmul.f32 0.088388346, %v522_v2 }
 0x18c   : > { %733 = vst [vmem:[%s1711_s17 + $0x60] sm:$0xff] %v524_v4  ;;  %v527_v6 = vpop.f32.mrb[26].mxu0 }
 0x18d   : > { %717 = vst [vmem:[%s1715_s8 + $0x60] sm:$0xff] %v701_v5  ;;  %v528_v7 = vadd.f32 %v527_v6, %v1704_v31  ;;  %v529_v8 = vpop.f32.mrb[27].mxu0 }
 0x18e   : > { %v530_v9 = vadd.f32 %v529_v8, %v1706_v32 }
 0x18f   : > { %v702_v10 = vmul.f32 0.088388346, %v528_v7 }
 0x190   : > { %734 = vst [vmem:[%s1711_s17 + $0x68] sm:$0xff] %v530_v9  ;;  %v533_v11 = vpop.f32.mrb[28].mxu0 }
 0x191   : > { %718 = vst [vmem:[%s1715_s8 + $0x68] sm:$0xff] %v702_v10  ;;  %v534_v12 = vadd.f32 %v533_v11, %v1704_v31  ;;  %v535_v13 = vpop.f32.mrb[29].mxu0 }
 0x192   : > { %v536_v14 = vadd.f32 %v535_v13, %v1706_v32 }
 0x193   : > { %v703_v15 = vmul.f32 0.088388346, %v534_v12 }
 0x194   : > { %735 = vst [vmem:[%s1711_s17 + $0x70] sm:$0xff] %v536_v14  ;;  %v539_v16 = vpop.f32.mrb[30].mxu0 }
 0x195   : > { %719 = vst [vmem:[%s1715_s8 + $0x70] sm:$0xff] %v703_v15  ;;  %v540_v17 = vadd.f32 %v539_v16, %v1704_v31  ;;  %v541_v18 = vpop.f32.mrb[31].mxu0 }
 0x196   : > { %v542_v19 = vadd.f32 %v541_v18, %v1706_v32 }
 0x197   : > { %v704_v20 = vmul.f32 0.088388346, %v540_v17 }
 0x198   : > { %736 = vst [vmem:[%s1711_s17 + $0x78] sm:$0xff] %v542_v19 }
 0x199   : > { %720 = vst [vmem:[%s1715_s8 + $0x78] sm:$0xff] %v704_v20 }
 0x19a   : > { %1321 = shalt.err (!%p1318_p9)
}
 0x19b   : > { %s1322_s17 = scalar_lea.hbm %s1819_s12, 2048  ;;  %s1326_s16 = scalar_lea.hbm %s1949_s4, 4096 }
 0x19c   : > { %p1323_p1 = scmp.ne.s32.totalorder %s1819_s12, %s1322_s17  ;;  %p1327_p7 = scmp.lt.u32.totalorder %s1819_s12, %s1949_s4 }
 0x19d   : > { %p1328_p13 = scmp.lt.u32.totalorder %s1326_s16, %s1322_s17  ;;  %p1330_p6 = scmp.lt.u32.totalorder %s1322_s17, %s1819_s12 }
 0x19e   : > { %p1324_p2 = pnand %p1323_p1, %p1592_p10 }
 0x19f   : > { %p1329_p4 = por %p1328_p13, %p1327_p7 }
 0x1a0   : > { %p1325_p3 = pneg %p1324_p2 }
 0x1a1   : > { %p1331_p8 = por %p1330_p6, %p1329_p4 }
 0x1a3   : > { %p1332_p12 = pnand %p1331_p8, %p1325_p3 }
 0x1a5   : > { %1335 = shalt.err (!%p1332_p12)
}
 0x1a6   : > { %s1464_s0 = smov 128   ;;  %s1465_s1 = smov 8  }
 0x1a7   : > { %1167 = dma.vmem_to_hbm [thread:$0]  (%p1592_p10), %s1823_s15, 2048, %s1819_s12, %s1841_s25, %s1464_s0, %s1464_s0, %s1465_s1  }
 0x1a8   : > { %s754_s21 = scalar_lea.sflag [#allocation4], %s1648_s29  ;;  %s1336_s26 = scalar_lea.vmem %s1830_s10, 2048 }
 0x1a9   : > { %p1337_p11 = scmp.ne.s32.totalorder %s1830_s10, %s1336_s26  ;;  %s1466_s17 = smov [#allocation7]  }
 0x1aa   : > { %s1340_s8 = sshll.u32 %s1466_s17, 4  ;;  %s1341_s8 = int_to_ptr.vmem [resolvable:$false] %s1340_s8 }
 0x1ab   : > { %p1338_p0 = pnand %p1337_p11, %p1592_p10  ;;  %s1342_s9 = scalar_lea.vmem %s1341_s8, 4096 }
 0x1ac   : > { %p1343_p9 = scmp.lt.s32.totalorder %s1830_s10, %s1341_s8  ;;  %p1344_p1 = scmp.lt.s32.totalorder %s1342_s9, %s1336_s26 }
 0x1ad   : > { %p1339_p5 = pneg %p1338_p0 }
 0x1ae   : > { %p1345_p2 = por %p1344_p1, %p1343_p9 }
 0x1b0   : > { %p1346_p3 = pnand %p1345_p2, %p1339_p5 }
 0x1b2   : > { %1349 = shalt.err (!%p1346_p3)
}
 0x1b3   : > { %s1350_s15 = scalar_lea.hbm %s1828_s28, 2048  ;;  %s1354_s24 = scalar_lea.hbm %s1948_s3, 4096 }
 0x1b4   : > { %p1351_p7 = scmp.ne.s32.totalorder %s1828_s28, %s1350_s15  ;;  %p1355_p6 = scmp.lt.u32.totalorder %s1828_s28, %s1948_s3 }
 0x1b5   : > { %p1356_p8 = scmp.lt.u32.totalorder %s1354_s24, %s1350_s15  ;;  %p1358_p11 = scmp.lt.u32.totalorder %s1350_s15, %s1828_s28 }
 0x1b6   : > { %p1352_p13 = pnand %p1351_p7, %p1592_p10 }
 0x1b7   : > { %p1357_p12 = por %p1356_p8, %p1355_p6 }
 0x1b8   : > { %p1353_p4 = pneg %p1352_p13 }
 0x1b9   : > { %p1359_p0 = por %p1358_p11, %p1357_p12 }
 0x1bb   : > { %p1360_p5 = pnand %p1359_p0, %p1353_p4 }
 0x1bd   : > { %1363 = shalt.err (!%p1360_p5)
}
 0x1be   : > { %1166 = dma.vmem_to_hbm [thread:$0]  (%p1592_p10), %s1830_s10, 2048, %s1828_s28, %s754_s21, %s1464_s0, %s1464_s0, %s1465_s1  }
 0x1bf   : > { %s1364_s26 = scalar_lea.vmem %s1838_s14, 2048  ;;  %s1467_s8 = smov [#allocation10]  }
 0x1c0   : > { %p1365_p9 = scmp.ne.s32.totalorder %s1838_s14, %s1364_s26  ;;  %s1368_s9 = sshll.u32 %s1467_s8, 4  ;;  %s1369_s9 = int_to_ptr.vmem [resolvable:$false] %s1368_s9 }
 0x1c1   : > { %s1370_s15 = scalar_lea.vmem %s1369_s9, 4096  ;;  %p1371_p3 = scmp.lt.s32.totalorder %s1838_s14, %s1369_s9 }
 0x1c2   : > { %p1366_p1 = pnand %p1365_p9, %p1592_p10  ;;  %p1372_p7 = scmp.lt.s32.totalorder %s1370_s15, %s1364_s26 }
 0x1c4   : > { %p1367_p2 = pneg %p1366_p1  ;;  %p1373_p13 = por %p1372_p7, %p1371_p3 }
 0x1c6   : > { %p1374_p4 = pnand %p1373_p13, %p1367_p2 }
 0x1c8   : > { %1377 = shalt.err (!%p1374_p4)
}
 0x1c9   : > { %s1378_s29 = scalar_lea.hbm %s1836_s6, 2048  ;;  %s1382_s21 = scalar_lea.hbm %s1950_s5, 4096 }
 0x1ca   : > { %p1379_p6 = scmp.ne.s32.totalorder %s1836_s6, %s1378_s29  ;;  %p1383_p11 = scmp.lt.u32.totalorder %s1836_s6, %s1950_s5 }
 0x1cb   : > { %p1384_p0 = scmp.lt.u32.totalorder %s1382_s21, %s1378_s29  ;;  %p1386_p9 = scmp.lt.u32.totalorder %s1378_s29, %s1836_s6 }
 0x1cc   : > { %p1380_p8 = pnand %p1379_p6, %p1592_p10 }
 0x1cd   : > { %p1385_p5 = por %p1384_p0, %p1383_p11 }
 0x1ce   : > { %p1381_p12 = pneg %p1380_p8 }
 0x1cf   : > { %p1387_p1 = por %p1386_p9, %p1385_p5 }
 0x1d1   : > { %p1388_p2 = pnand %p1387_p1, %p1381_p12 }
 0x1d3   : > { %1391 = shalt.err (!%p1388_p2)
}
 0x1d4   : > { %1168 = dma.vmem_to_hbm [thread:$0]  (%p1592_p10), %s1838_s14, 2048, %s1836_s6, %s1841_s25, %s1464_s0, %s1464_s0, %s1465_s1  }
 0x1d5 PF: > { %s830_s24 = sand.u32 1, %s1434_s18   ;;  %p1971_p3 = scmp.ne.s32.totalorder %s1958_s27, 0 }
 0x1d6   : > { %p1972_p7 = scmp.ge.s32.totalorder %s1454_s23, 2  ;;  %s831_s30 = scalar_lea.sflag [#allocation4], %s830_s24 }
 0x1d8   : > { %p1181_p13 = pnand %p1972_p7, %p1971_p3 }
 0x1da   : > { %1425 = dma.done.wait (!%p1181_p13), %s831_s30, 2048  }
 0x1db   : > { %1427 = vsyncadd (!%p1181_p13), %s831_s30, 4294965248  ;;  %s1973_s11 = sadd.s32 4294967294, %s1454_s23  }
 0x1dc   : > { %s839_s17 = sand.u32 1, %s1973_s11  }
 0x1dd   : > { %s840_s26 = scalar_lea.sflag [#allocation9], %s839_s17 }
 0x1de   : > { %1429 = dma.done.wait (!%p1181_p13), %s840_s26, 4096  }
 0x1df   : > { %1431 = vsyncadd (!%p1181_p13), %s840_s26, 4294963200  ;;  %s26_s23 = sadd.s32 1, %s1454_s23   ;;  %s1974_s18 = smov %s1438_s19 }
 0x1e0   : > { %p23_p10 = scmp.ge.s32.totalorder %s26_s23, 4   ;;  %s1975_s19 = smov %s1442_s20 }
 0x1e1   : > { %s1976_s20 = smov %s1601_s13  ;;  %s1977_s21 = smov %s1450_s22 }
 0x1e2   : > { %s1978_s22 = smov %s1980_s7  ;;  %25 = sbr.rel (!%p23_p10) target bundleno = 12 (0xc), region = 113 }
 0x1e9   :  { %854 = vsyncpa [#allocation3], 1 }
 0x1ea   :  { %856 = vsyncpa [#allocation3 + $0x1], 1 }
 0x1eb   :  { %857 = vsyncpa [#allocation6], 1 }
 0x1ec   :  { %858 = vsyncpa [#allocation4], 1 }
 0x1ed   :  { %860 = vsyncpa [#allocation4 + $0x1], 1 }
 0x1ee   :  { %861 = vsyncpa [#allocation9], 1 }
 0x1ef   :  { %863 = vsyncpa [#allocation9 + $0x1], 1 }

</bundles_post_ra>
